<compile_context>
chip_gen: v7x
topology: tpu7x:2x2x1
jax: 0.10.0
libtpu: 0.0.40
codegen_flags: <defaults>
</compile_context>

<pallas_src>
import functools
import math

import jax
import jax.numpy as jnp
from jax.experimental import pallas as pl
from jax.experimental.pallas import tpu as pltpu

_LN_EPS = 1e-12


def _ln(y, g, b, eps):
    mean = jnp.mean(y, axis=-1, keepdims=True)
    var = jnp.mean((y - mean) ** 2, axis=-1, keepdims=True)
    return (y - mean) * jax.lax.rsqrt(var + eps) * g + b


# ----------------------------- Pallas kernels ------------------------------

def _layernorm_kernel(x_ref, g_ref, b_ref, o_ref, *, eps):
    x = x_ref[0]                                           # [S, H]
    o_ref[0] = _ln(x, g_ref[...], b_ref[...], eps).astype(o_ref.dtype)


def layernorm(x, g, b, eps=_LN_EPS):
    """LayerNorm over last dim.  x:[B,S,H], g/b:[1,H]."""
    B, S, H = x.shape
    return pl.pallas_call(
        functools.partial(_layernorm_kernel, eps=eps),
        out_shape=jax.ShapeDtypeStruct((B, S, H), jnp.float32),
        grid=(B,),
        in_specs=[pl.BlockSpec((1, S, H), lambda i: (i, 0, 0)),
                  pl.BlockSpec((1, H), lambda i: (0, 0)),
                  pl.BlockSpec((1, H), lambda i: (0, 0))],
        out_specs=pl.BlockSpec((1, S, H), lambda i: (i, 0, 0)),
        compiler_params=pltpu.CompilerParams(dimension_semantics=("parallel",)),
    )(x, g, b)


def _attn_block_kernel(x_ref, m_ref, wqkv_ref, bqkv_ref, wo_ref, bo_ref,
                       g_ref, b_ref, o_ref, *, n_heads, eps):
    """Fused: QKV proj -> per-head attention -> out proj -> +residual -> LN."""
    S, H = x_ref.shape[1], x_ref.shape[2]
    dh = H // n_heads

    x = x_ref[0]                                           # [S, H] f32
    xb = x.astype(jnp.bfloat16)
    wqkv = wqkv_ref[...].astype(jnp.bfloat16)              # [H, 3H]
    # 1/sqrt(dh) is already folded into the Q columns of wqkv/bqkv.
    qkv = jnp.dot(xb, wqkv, preferred_element_type=jnp.float32) + bqkv_ref[...]  # [S, 3H]

    add_mask = m_ref[0]                                    # [1, S] (0 / -1e9)
    wo = wo_ref[...].astype(jnp.bfloat16)                  # [H, H]

    attn = jnp.zeros((S, H), jnp.float32)
    for h in range(n_heads):                               # static, small n_heads
        q = qkv[:, h * dh:(h + 1) * dh].astype(jnp.bfloat16)            # [S, dh]
        k = qkv[:, H + h * dh:H + (h + 1) * dh].astype(jnp.bfloat16)    # [S, dh]
        v = qkv[:, 2 * H + h * dh:2 * H + (h + 1) * dh].astype(jnp.bfloat16)
        # scores [S, S] = q @ k^T   (contraction on dh via dot_general, no transpose)
        s = jax.lax.dot_general(q, k, (((1,), (1,)), ((), ())),
                                preferred_element_type=jnp.float32)
        s = s + add_mask
        s = s - jnp.max(s, axis=-1, keepdims=True)
        p = jnp.exp(s)                                     # f32 softmax (v5e-safe)
        p = p * pl.reciprocal(jnp.sum(p, axis=-1, keepdims=True), approx=True)
        ctx = jnp.dot(p.astype(jnp.bfloat16), v,
                      preferred_element_type=jnp.float32)  # [S, dh]
        # accumulate ctx_h @ wo[h*dh:(h+1)*dh, :]  (avoids an in-kernel concat)
        attn = attn + jnp.dot(ctx.astype(jnp.bfloat16), wo[h * dh:(h + 1) * dh, :],
                              preferred_element_type=jnp.float32)

    y = attn + bo_ref[...] + x                             # out-proj bias + residual
    o_ref[0] = _ln(y, g_ref[...], b_ref[...], eps).astype(o_ref.dtype)


def attn_block(x, add_mask, wqkv, bqkv, wo, bo, ln_g, ln_b, *, n_heads):
    """x:[B,S,H], add_mask:[B,1,S] -> [B,S,H]."""
    B, S, H = x.shape
    return pl.pallas_call(
        functools.partial(_attn_block_kernel, n_heads=n_heads, eps=_LN_EPS),
        out_shape=jax.ShapeDtypeStruct((B, S, H), jnp.float32),
        grid=(B,),
        in_specs=[pl.BlockSpec((1, S, H), lambda i: (i, 0, 0)),
                  pl.BlockSpec((1, 1, S), lambda i: (i, 0, 0)),
                  pl.BlockSpec((H, 3 * H), lambda i: (0, 0)),
                  pl.BlockSpec((1, 3 * H), lambda i: (0, 0)),
                  pl.BlockSpec((H, H), lambda i: (0, 0)),
                  pl.BlockSpec((1, H), lambda i: (0, 0)),
                  pl.BlockSpec((1, H), lambda i: (0, 0)),
                  pl.BlockSpec((1, H), lambda i: (0, 0))],
        out_specs=pl.BlockSpec((1, S, H), lambda i: (i, 0, 0)),
        compiler_params=pltpu.CompilerParams(dimension_semantics=("parallel",)),
    )(x, add_mask, wqkv, bqkv, wo, bo, ln_g, ln_b)


def _ffn_block_kernel(x_ref, wi_ref, bi_ref, wo_ref, bo_ref, g_ref, b_ref, o_ref,
                      *, eps):
    """Fused: intermediate GELU matmul -> output matmul -> +residual -> LN."""
    x = x_ref[0]                                           # [S, H]
    xb = x.astype(jnp.bfloat16)
    h1 = jnp.dot(xb, wi_ref[...].astype(jnp.bfloat16),
                 preferred_element_type=jnp.float32) + bi_ref[...]      # [S, I]
    # GELU (tanh approximation) in f32.
    h1 = 0.5 * h1 * (1.0 + jnp.tanh(0.7978845608028654 *
                                    (h1 + 0.044715 * h1 * h1 * h1)))
    y = jnp.dot(h1.astype(jnp.bfloat16), wo_ref[...].astype(jnp.bfloat16),
                preferred_element_type=jnp.float32) + bo_ref[...] + x   # [S, H]
    o_ref[0] = _ln(y, g_ref[...], b_ref[...], eps).astype(o_ref.dtype)


def ffn_block(x, wi, bi, wo2, bo2, ln_g, ln_b):
    B, S, H = x.shape
    I = wi.shape[1]
    return pl.pallas_call(
        functools.partial(_ffn_block_kernel, eps=_LN_EPS),
        out_shape=jax.ShapeDtypeStruct((B, S, H), jnp.float32),
        grid=(B,),
        in_specs=[pl.BlockSpec((1, S, H), lambda i: (i, 0, 0)),
                  pl.BlockSpec((H, I), lambda i: (0, 0)),
                  pl.BlockSpec((1, I), lambda i: (0, 0)),
                  pl.BlockSpec((I, H), lambda i: (0, 0)),
                  pl.BlockSpec((1, H), lambda i: (0, 0)),
                  pl.BlockSpec((1, H), lambda i: (0, 0)),
                  pl.BlockSpec((1, H), lambda i: (0, 0))],
        out_specs=pl.BlockSpec((1, S, H), lambda i: (i, 0, 0)),
        compiler_params=pltpu.CompilerParams(dimension_semantics=("parallel",)),
    )(x, wi, bi, wo2, bo2, ln_g, ln_b)


def _head_kernel(cls_ref, pw_ref, pb_ref, f1w_ref, f1b_ref, ow_ref, ob_ref, o_ref):
    """Fused: pooler tanh -> fc1 ReLU -> out logits (three tiny chained matmuls)."""
    c = cls_ref[...].astype(jnp.bfloat16)                  # [B, H]
    pooled = jnp.tanh(jnp.dot(c, pw_ref[...].astype(jnp.bfloat16),
                              preferred_element_type=jnp.float32) + pb_ref[...])
    h = jnp.dot(pooled.astype(jnp.bfloat16), f1w_ref[...].astype(jnp.bfloat16),
                preferred_element_type=jnp.float32) + f1b_ref[...]
    h = jnp.maximum(h, 0.0)
    logits = jnp.dot(h.astype(jnp.bfloat16), ow_ref[...].astype(jnp.bfloat16),
                     preferred_element_type=jnp.float32) + ob_ref[...]
    o_ref[...] = logits.astype(o_ref.dtype)


def classifier_head(cls, pw, pb, f1w, f1b, ow, ob):
    B, H = cls.shape
    F = f1w.shape[1]
    C = ow.shape[1]
    return pl.pallas_call(
        _head_kernel,
        out_shape=jax.ShapeDtypeStruct((B, C), jnp.float32),
        in_specs=[pl.BlockSpec((B, H), lambda: (0, 0)),
                  pl.BlockSpec((H, H), lambda: (0, 0)),
                  pl.BlockSpec((1, H), lambda: (0, 0)),
                  pl.BlockSpec((H, F), lambda: (0, 0)),
                  pl.BlockSpec((1, F), lambda: (0, 0)),
                  pl.BlockSpec((F, C), lambda: (0, 0)),
                  pl.BlockSpec((1, C), lambda: (0, 0))],
        out_specs=pl.BlockSpec((B, C), lambda: (0, 0)),
    )(cls, pw, pb, f1w, f1b, ow, ob)


# ------------------------- parameters (synthetic) ---------------------------

def init_params(key, *, vocab=50, hidden=32, n_heads=2, inter=64, n_layers=2,
                max_pos=16, fc1_dim=16, n_classes=3):
    keys = iter(jax.random.split(key, 256))
    dh = hidden // n_heads
    q_scale = 1.0 / math.sqrt(dh)

    def w(shape, s=0.02):
        return (s * jax.random.normal(next(keys), shape)).astype(jnp.float32)

    def zeros(n):
        return jnp.zeros((1, n), jnp.float32)

    def ones(n):
        return jnp.ones((1, n), jnp.float32)

    params = dict(
        word_emb=w((vocab, hidden)),
        pos_emb=w((max_pos, hidden)),
        type_emb=w((2, hidden)),
        emb_ln_g=ones(hidden), emb_ln_b=zeros(hidden),
        pooler_w=w((hidden, hidden)), pooler_b=zeros(hidden),
        fc1_w=w((hidden, fc1_dim)), fc1_b=zeros(fc1_dim),
        out_w=w((fc1_dim, n_classes)), out_b=zeros(n_classes),
        layers=[],
    )
    for _ in range(n_layers):
        wq, wk, wv = w((hidden, hidden)), w((hidden, hidden)), w((hidden, hidden))
        bq, bk, bv = zeros(hidden), zeros(hidden), zeros(hidden)
        params["layers"].append(dict(
            # fused QKV projection; 1/sqrt(dh) attention scale folded into Q
            wqkv=jnp.concatenate([wq * q_scale, wk, wv], axis=1),      # [H, 3H]
            bqkv=jnp.concatenate([bq * q_scale, bk, bv], axis=1),      # [1, 3H]
            wo=w((hidden, hidden)), bo=zeros(hidden),
            ln1_g=ones(hidden), ln1_b=zeros(hidden),
            wi=w((hidden, inter)), bi=zeros(inter),
            wo2=w((inter, hidden)), bo2=zeros(hidden),
            ln2_g=ones(hidden), ln2_b=zeros(hidden),
        ))
    return params


# ------------------------------ forward pass --------------------------------

@functools.partial(jax.jit, static_argnames=("n_heads",))
def encoder_classifier_forward(params, sent_id, mask, *, n_heads):
    """Equivalent of Encoder_Classifier.forward(sent_id, mask) -> logits [B, n_classes]."""
    B, S = sent_id.shape

    # --- BERT embeddings (gathers stay in plain JAX glue) ---
    x = (params["word_emb"][sent_id]
         + params["pos_emb"][jnp.arange(S)][None, :, :]
         + params["type_emb"][0][None, None, :])            # [B, S, H]
    x = layernorm(x, params["emb_ln_g"], params["emb_ln_b"])

    # additive attention mask kept at [B, 1, S]; broadcast over heads in-kernel
    add_mask = ((1.0 - mask.astype(jnp.float32)) * -1e9)[:, None, :]

    # --- BERT encoder layers: 2 fused pallas_calls per layer ---
    for lyr in params["layers"]:
        x = attn_block(x, add_mask, lyr["wqkv"], lyr["bqkv"], lyr["wo"], lyr["bo"],
                       lyr["ln1_g"], lyr["ln1_b"], n_heads=n_heads)
        x = ffn_block(x, lyr["wi"], lyr["bi"], lyr["wo2"], lyr["bo2"],
                      lyr["ln2_g"], lyr["ln2_b"])

    # --- pooler + fc1(ReLU) + out, fused into one kernel ---
    cls = x[:, 0, :]                                         # [B, H]
    logits = classifier_head(cls, params["pooler_w"], params["pooler_b"],
                             params["fc1_w"], params["fc1_b"],
                             params["out_w"], params["out_b"])
    return logits


# ---------------------------------- main -------------------------------------

if __name__ == "__main__":
    key = jax.random.PRNGKey(0)
    k_param, k_ids = jax.random.split(key)

    B, S = 2, 8
    n_classes = 3
    n_heads = 2
    params = init_params(k_param, n_heads=n_heads, n_classes=n_classes)

    sent_id = jax.random.randint(k_ids, (B, S), 0, 50, dtype=jnp.int32)
    # attention mask: second sequence has 2 padding tokens
    mask = jnp.array([[1, 1, 1, 1, 1, 1, 1, 1],
                      [1, 1, 1, 1, 1, 1, 0, 0]], dtype=jnp.int32)

    logits = encoder_classifier_forward(params, sent_id, mask, n_heads=n_heads)
    jax.block_until_ready(logits)
    assert logits.shape == (B, n_classes), logits.shape
    print("KERNEL_OK")
</pallas_src>

<mosaic_0001>
module attributes {stable_mosaic.version = 11 : i64} {
  func.func @_layernorm_kernel(%arg0: i32, %arg1: memref<1x8x32xf32, #tpu.memory_space<vmem>>, %arg2: memref<1x32xf32, #tpu.memory_space<vmem>>, %arg3: memref<1x32xf32, #tpu.memory_space<vmem>>, %arg4: memref<1x8x32xf32, #tpu.memory_space<vmem>>) attributes {dimension_semantics = [#tpu.dimension_semantics<parallel>], iteration_bounds = array<i64: 2>, scalar_prefetch = 0 : i64, scratch_operands = 0 : i64, tpu.core_type = #tpu.core_type<tc>, window_params = [{transform_indices = @transform_0, window_bounds = array<i64: 1, 8, 32>}, {pipeline_mode = #tpu.pipeline_mode<synchronous>, transform_indices = @transform_1, window_bounds = array<i64: 1, 32>}, {pipeline_mode = #tpu.pipeline_mode<synchronous>, transform_indices = @transform_2, window_bounds = array<i64: 1, 32>}, {transform_indices = @transform_3, window_bounds = array<i64: 1, 8, 32>}]} {
    %c0 = arith.constant 0 : index
    %c0_0 = arith.constant 0 : index
    %c0_1 = arith.constant 0 : index
    %0 = vector.load %arg1[%c0, %c0_0, %c0_1] : memref<1x8x32xf32, #tpu.memory_space<vmem>>, vector<1x8x32xf32>
    %1 = vector.shape_cast %0 : vector<1x8x32xf32> to vector<8x32xf32>
    %c0_2 = arith.constant 0 : index
    %c0_3 = arith.constant 0 : index
    %2 = vector.load %arg2[%c0_2, %c0_3] : memref<1x32xf32, #tpu.memory_space<vmem>>, vector<1x32xf32>
    %c0_4 = arith.constant 0 : index
    %c0_5 = arith.constant 0 : index
    %3 = vector.load %arg3[%c0_4, %c0_5] : memref<1x32xf32, #tpu.memory_space<vmem>>, vector<1x32xf32>
    %cst = arith.constant dense<0.000000e+00> : vector<8xf32>
    %4 = vector.multi_reduction <add>, %1, %cst [1] : vector<8x32xf32> to vector<8xf32>
    %5 = vector.shape_cast %4 : vector<8xf32> to vector<8x1xf32>
    %cst_6 = arith.constant 3.200000e+01 : f32
    %6 = vector.broadcast %cst_6 : f32 to vector<8x1xf32>
    %7 = arith.divf %5, %6 : vector<8x1xf32>
    %8 = vector.broadcast %7 : vector<8x1xf32> to vector<8x32xf32>
    %9 = arith.subf %1, %8 : vector<8x32xf32>
    %10 = arith.mulf %9, %9 : vector<8x32xf32>
    %cst_7 = arith.constant dense<0.000000e+00> : vector<8xf32>
    %11 = vector.multi_reduction <add>, %10, %cst_7 [1] : vector<8x32xf32> to vector<8xf32>
    %12 = vector.shape_cast %11 : vector<8xf32> to vector<8x1xf32>
    %cst_8 = arith.constant 3.200000e+01 : f32
    %13 = vector.broadcast %cst_8 : f32 to vector<8x1xf32>
    %14 = arith.divf %12, %13 : vector<8x1xf32>
    %15 = vector.broadcast %7 : vector<8x1xf32> to vector<8x32xf32>
    %16 = arith.subf %1, %15 : vector<8x32xf32>
    %cst_9 = arith.constant 9.99999996E-13 : f32
    %17 = vector.broadcast %cst_9 : f32 to vector<8x1xf32>
    %18 = arith.addf %14, %17 : vector<8x1xf32>
    %19 = math.rsqrt %18 : vector<8x1xf32>
    %20 = vector.broadcast %19 : vector<8x1xf32> to vector<8x32xf32>
    %21 = arith.mulf %16, %20 : vector<8x32xf32>
    %22 = vector.broadcast %2 : vector<1x32xf32> to vector<8x32xf32>
    %23 = arith.mulf %21, %22 : vector<8x32xf32>
    %24 = vector.broadcast %3 : vector<1x32xf32> to vector<8x32xf32>
    %25 = arith.addf %23, %24 : vector<8x32xf32>
    %c0_10 = arith.constant 0 : index
    %c0_11 = arith.constant 0 : index
    %c0_12 = arith.constant 0 : index
    %26 = vector.load %arg4[%c0_10, %c0_11, %c0_12] : memref<1x8x32xf32, #tpu.memory_space<vmem>>, vector<1x8x32xf32>
    %27 = vector.shape_cast %26 : vector<1x8x32xf32> to vector<8x32xf32>
    %28 = vector.shape_cast %25 : vector<8x32xf32> to vector<1x8x32xf32>
    tpu.vector_store %arg4[%c0_10, %c0_11, %c0_12], %28 {strides = array<i32>} : memref<1x8x32xf32, #tpu.memory_space<vmem>>, vector<1x8x32xf32>,
    return
  }
  func.func @transform_0(%arg0: i32) -> (i32, i32, i32) {
    %c0_i32 = arith.constant 0 : i32
    %c0_i32_0 = arith.constant 0 : i32
    %c0_i32_1 = arith.constant 0 : i32
    return %arg0, %c0_i32, %c0_i32_0 : i32, i32, i32
  }
  func.func @transform_1(%arg0: i32) -> (i32, i32) {
    %c0_i32 = arith.constant 0 : i32
    %c0_i32_0 = arith.constant 0 : i32
    %c0_i32_1 = arith.constant 0 : i32
    return %c0_i32, %c0_i32_0 : i32, i32
  }
  func.func @transform_2(%arg0: i32) -> (i32, i32) {
    %c0_i32 = arith.constant 0 : i32
    %c0_i32_0 = arith.constant 0 : i32
    %c0_i32_1 = arith.constant 0 : i32
    return %c0_i32, %c0_i32_0 : i32, i32
  }
  func.func @transform_3(%arg0: i32) -> (i32, i32, i32) {
    %c0_i32 = arith.constant 0 : i32
    %c0_i32_0 = arith.constant 0 : i32
    %c0_i32_1 = arith.constant 0 : i32
    return %arg0, %c0_i32, %c0_i32_0 : i32, i32, i32
  }
}

module attributes {stable_mosaic.version = 11 : i64} {
  func.func @_ffn_block_kernel(%arg0: i32, %arg1: memref<1x8x32xf32, #tpu.memory_space<vmem>>, %arg2: memref<32x64xf32, #tpu.memory_space<vmem>>, %arg3: memref<1x64xf32, #tpu.memory_space<vmem>>, %arg4: memref<64x32xf32, #tpu.memory_space<vmem>>, %arg5: memref<1x32xf32, #tpu.memory_space<vmem>>, %arg6: memref<1x32xf32, #tpu.memory_space<vmem>>, %arg7: memref<1x32xf32, #tpu.memory_space<vmem>>, %arg8: memref<1x8x32xf32, #tpu.memory_space<vmem>>) attributes {dimension_semantics = [#tpu.dimension_semantics<parallel>], iteration_bounds = array<i64: 2>, scalar_prefetch = 0 : i64, scratch_operands = 0 : i64, tpu.core_type = #tpu.core_type<tc>, window_params = [{transform_indices = @transform_0, window_bounds = array<i64: 1, 8, 32>}, {pipeline_mode = #tpu.pipeline_mode<synchronous>, transform_indices = @transform_1, window_bounds = array<i64: 32, 64>}, {pipeline_mode = #tpu.pipeline_mode<synchronous>, transform_indices = @transform_2, window_bounds = array<i64: 1, 64>}, {pipeline_mode = #tpu.pipeline_mode<synchronous>, transform_indices = @transform_3, window_bounds = array<i64: 64, 32>}, {pipeline_mode = #tpu.pipeline_mode<synchronous>, transform_indices = @transform_4, window_bounds = array<i64: 1, 32>}, {pipeline_mode = #tpu.pipeline_mode<synchronous>, transform_indices = @transform_5, window_bounds = array<i64: 1, 32>}, {pipeline_mode = #tpu.pipeline_mode<synchronous>, transform_indices = @transform_6, window_bounds = array<i64: 1, 32>}, {transform_indices = @transform_7, window_bounds = array<i64: 1, 8, 32>}]} {
    %c0 = arith.constant 0 : index
    %c0_0 = arith.constant 0 : index
    %c0_1 = arith.constant 0 : index
    %0 = vector.load %arg1[%c0, %c0_0, %c0_1] : memref<1x8x32xf32, #tpu.memory_space<vmem>>, vector<1x8x32xf32>
    %1 = vector.shape_cast %0 : vector<1x8x32xf32> to vector<8x32xf32>
    %2 = arith.truncf %1 : vector<8x32xf32> to vector<8x32xbf16>
    %c0_2 = arith.constant 0 : index
    %c0_3 = arith.constant 0 : index
    %3 = vector.load %arg2[%c0_2, %c0_3] : memref<32x64xf32, #tpu.memory_space<vmem>>, vector<32x64xf32>
    %4 = arith.truncf %3 : vector<32x64xf32> to vector<32x64xbf16>
    %cst = arith.constant dense<0.000000e+00> : vector<8x64xf32>
    %5 = tpu.matmul %2, %4, %cst {dimension_numbers = #tpu.dot_dimension_numbers<[1], [0], [0], [1], [0, 0, 1, 1], [], []>} : vector<8x32xbf16>, vector<32x64xbf16>, vector<8x64xf32> -> vector<8x64xf32>
    %c0_4 = arith.constant 0 : index
    %c0_5 = arith.constant 0 : index
    %6 = vector.load %arg3[%c0_4, %c0_5] : memref<1x64xf32, #tpu.memory_space<vmem>>, vector<1x64xf32>
    %7 = vector.broadcast %6 : vector<1x64xf32> to vector<8x64xf32>
    %8 = arith.addf %5, %7 : vector<8x64xf32>
    %cst_6 = arith.constant 5.000000e-01 : f32
    %9 = vector.broadcast %cst_6 : f32 to vector<8x64xf32>
    %10 = arith.mulf %9, %8 : vector<8x64xf32>
    %cst_7 = arith.constant 4.471500e-02 : f32
    %11 = vector.broadcast %cst_7 : f32 to vector<8x64xf32>
    %12 = arith.mulf %11, %8 : vector<8x64xf32>
    %13 = arith.mulf %12, %8 : vector<8x64xf32>
    %14 = arith.mulf %13, %8 : vector<8x64xf32>
    %15 = arith.addf %8, %14 : vector<8x64xf32>
    %cst_8 = arith.constant 0.797884583 : f32
    %16 = vector.broadcast %cst_8 : f32 to vector<8x64xf32>
    %17 = arith.mulf %16, %15 : vector<8x64xf32>
    %18 = math.tanh %17 : vector<8x64xf32>
    %cst_9 = arith.constant 1.000000e+00 : f32
    %19 = vector.broadcast %cst_9 : f32 to vector<8x64xf32>
    %20 = arith.addf %19, %18 : vector<8x64xf32>
    %21 = arith.mulf %10, %20 : vector<8x64xf32>
    %22 = arith.truncf %21 : vector<8x64xf32> to vector<8x64xbf16>
    %c0_10 = arith.constant 0 : index
    %c0_11 = arith.constant 0 : index
    %23 = vector.load %arg4[%c0_10, %c0_11] : memref<64x32xf32, #tpu.memory_space<vmem>>, vector<64x32xf32>
    %24 = arith.truncf %23 : vector<64x32xf32> to vector<64x32xbf16>
    %cst_12 = arith.constant dense<0.000000e+00> : vector<8x32xf32>
    %25 = tpu.matmul %22, %24, %cst_12 {dimension_numbers = #tpu.dot_dimension_numbers<[1], [0], [0], [1], [0, 0, 1, 1], [], []>} : vector<8x64xbf16>, vector<64x32xbf16>, vector<8x32xf32> -> vector<8x32xf32>
    %c0_13 = arith.constant 0 : index
    %c0_14 = arith.constant 0 : index
    %26 = vector.load %arg5[%c0_13, %c0_14] : memref<1x32xf32, #tpu.memory_space<vmem>>, vector<1x32xf32>
    %27 = vector.broadcast %26 : vector<1x32xf32> to vector<8x32xf32>
    %28 = arith.addf %25, %27 : vector<8x32xf32>
    %29 = arith.addf %28, %1 : vector<8x32xf32>
    %c0_15 = arith.constant 0 : index
    %c0_16 = arith.constant 0 : index
    %30 = vector.load %arg6[%c0_15, %c0_16] : memref<1x32xf32, #tpu.memory_space<vmem>>, vector<1x32xf32>
    %c0_17 = arith.constant 0 : index
    %c0_18 = arith.constant 0 : index
    %31 = vector.load %arg7[%c0_17, %c0_18] : memref<1x32xf32, #tpu.memory_space<vmem>>, vector<1x32xf32>
    %cst_19 = arith.constant dense<0.000000e+00> : vector<8xf32>
    %32 = vector.multi_reduction <add>, %29, %cst_19 [1] : vector<8x32xf32> to vector<8xf32>
    %33 = vector.shape_cast %32 : vector<8xf32> to vector<8x1xf32>
    %cst_20 = arith.constant 3.200000e+01 : f32
    %34 = vector.broadcast %cst_20 : f32 to vector<8x1xf32>
    %35 = arith.divf %33, %34 : vector<8x1xf32>
    %36 = vector.broadcast %35 : vector<8x1xf32> to vector<8x32xf32>
    %37 = arith.subf %29, %36 : vector<8x32xf32>
    %38 = arith.mulf %37, %37 : vector<8x32xf32>
    %cst_21 = arith.constant dense<0.000000e+00> : vector<8xf32>
    %39 = vector.multi_reduction <add>, %38, %cst_21 [1] : vector<8x32xf32> to vector<8xf32>
    %40 = vector.shape_cast %39 : vector<8xf32> to vector<8x1xf32>
    %cst_22 = arith.constant 3.200000e+01 : f32
    %41 = vector.broadcast %cst_22 : f32 to vector<8x1xf32>
    %42 = arith.divf %40, %41 : vector<8x1xf32>
    %43 = vector.broadcast %35 : vector<8x1xf32> to vector<8x32xf32>
    %44 = arith.subf %29, %43 : vector<8x32xf32>
    %cst_23 = arith.constant 9.99999996E-13 : f32
    %45 = vector.broadcast %cst_23 : f32 to vector<8x1xf32>
    %46 = arith.addf %42, %45 : vector<8x1xf32>
    %47 = math.rsqrt %46 : vector<8x1xf32>
    %48 = vector.broadcast %47 : vector<8x1xf32> to vector<8x32xf32>
    %49 = arith.mulf %44, %48 : vector<8x32xf32>
    %50 = vector.broadcast %30 : vector<1x32xf32> to vector<8x32xf32>
    %51 = arith.mulf %49, %50 : vector<8x32xf32>
    %52 = vector.broadcast %31 : vector<1x32xf32> to vector<8x32xf32>
    %53 = arith.addf %51, %52 : vector<8x32xf32>
    %c0_24 = arith.constant 0 : index
    %c0_25 = arith.constant 0 : index
    %c0_26 = arith.constant 0 : index
    %54 = vector.load %arg8[%c0_24, %c0_25, %c0_26] : memref<1x8x32xf32, #tpu.memory_space<vmem>>, vector<1x8x32xf32>
    %55 = vector.shape_cast %54 : vector<1x8x32xf32> to vector<8x32xf32>
    %56 = vector.shape_cast %53 : vector<8x32xf32> to vector<1x8x32xf32>
    tpu.vector_store %arg8[%c0_24, %c0_25, %c0_26], %56 {strides = array<i32>} : memref<1x8x32xf32, #tpu.memory_space<vmem>>, vector<1x8x32xf32>,
    return
  }
  func.func @transform_0(%arg0: i32) -> (i32, i32, i32) {
    %c0_i32 = arith.constant 0 : i32
    %c0_i32_0 = arith.constant 0 : i32
    %c0_i32_1 = arith.constant 0 : i32
    return %arg0, %c0_i32, %c0_i32_0 : i32, i32, i32
  }
  func.func @transform_1(%arg0: i32) -> (i32, i32) {
    %c0_i32 = arith.constant 0 : i32
    %c0_i32_0 = arith.constant 0 : i32
    %c0_i32_1 = arith.constant 0 : i32
    return %c0_i32, %c0_i32_0 : i32, i32
  }
  func.func @transform_2(%arg0: i32) -> (i32, i32) {
    %c0_i32 = arith.constant 0 : i32
    %c0_i32_0 = arith.constant 0 : i32
    %c0_i32_1 = arith.constant 0 : i32
    return %c0_i32, %c0_i32_0 : i32, i32
  }
  func.func @transform_3(%arg0: i32) -> (i32, i32) {
    %c0_i32 = arith.constant 0 : i32
    %c0_i32_0 = arith.constant 0 : i32
    %c0_i32_1 = arith.constant 0 : i32
    return %c0_i32, %c0_i32_0 : i32, i32
  }
  func.func @transform_4(%arg0: i32) -> (i32, i32) {
    %c0_i32 = arith.constant 0 : i32
    %c0_i32_0 = arith.constant 0 : i32
    %c0_i32_1 = arith.constant 0 : i32
    return %c0_i32, %c0_i32_0 : i32, i32
  }
  func.func @transform_5(%arg0: i32) -> (i32, i32) {
    %c0_i32 = arith.constant 0 : i32
    %c0_i32_0 = arith.constant 0 : i32
    %c0_i32_1 = arith.constant 0 : i32
    return %c0_i32, %c0_i32_0 : i32, i32
  }
  func.func @transform_6(%arg0: i32) -> (i32, i32) {
    %c0_i32 = arith.constant 0 : i32
    %c0_i32_0 = arith.constant 0 : i32
    %c0_i32_1 = arith.constant 0 : i32
    return %c0_i32, %c0_i32_0 : i32, i32
  }
  func.func @transform_7(%arg0: i32) -> (i32, i32, i32) {
    %c0_i32 = arith.constant 0 : i32
    %c0_i32_0 = arith.constant 0 : i32
    %c0_i32_1 = arith.constant 0 : i32
    return %arg0, %c0_i32, %c0_i32_0 : i32, i32, i32
  }
}

module attributes {stable_mosaic.version = 11 : i64} {
  func.func @_attn_block_kernel(%arg0: i32, %arg1: memref<1x8x32xf32, #tpu.memory_space<vmem>>, %arg2: memref<1x1x8xf32, #tpu.memory_space<vmem>>, %arg3: memref<32x96xf32, #tpu.memory_space<vmem>>, %arg4: memref<1x96xf32, #tpu.memory_space<vmem>>, %arg5: memref<32x32xf32, #tpu.memory_space<vmem>>, %arg6: memref<1x32xf32, #tpu.memory_space<vmem>>, %arg7: memref<1x32xf32, #tpu.memory_space<vmem>>, %arg8: memref<1x32xf32, #tpu.memory_space<vmem>>, %arg9: memref<1x8x32xf32, #tpu.memory_space<vmem>>) attributes {dimension_semantics = [#tpu.dimension_semantics<parallel>], iteration_bounds = array<i64: 2>, scalar_prefetch = 0 : i64, scratch_operands = 0 : i64, tpu.core_type = #tpu.core_type<tc>, window_params = [{transform_indices = @transform_0, window_bounds = array<i64: 1, 8, 32>}, {transform_indices = @transform_1, window_bounds = array<i64: 1, 1, 8>}, {pipeline_mode = #tpu.pipeline_mode<synchronous>, transform_indices = @transform_2, window_bounds = array<i64: 32, 96>}, {pipeline_mode = #tpu.pipeline_mode<synchronous>, transform_indices = @transform_3, window_bounds = array<i64: 1, 96>}, {pipeline_mode = #tpu.pipeline_mode<synchronous>, transform_indices = @transform_4, window_bounds = array<i64: 32, 32>}, {pipeline_mode = #tpu.pipeline_mode<synchronous>, transform_indices = @transform_5, window_bounds = array<i64: 1, 32>}, {pipeline_mode = #tpu.pipeline_mode<synchronous>, transform_indices = @transform_6, window_bounds = array<i64: 1, 32>}, {pipeline_mode = #tpu.pipeline_mode<synchronous>, transform_indices = @transform_7, window_bounds = array<i64: 1, 32>}, {transform_indices = @transform_8, window_bounds = array<i64: 1, 8, 32>}]} {
    %c0 = arith.constant 0 : index
    %c0_0 = arith.constant 0 : index
    %c0_1 = arith.constant 0 : index
    %0 = vector.load %arg1[%c0, %c0_0, %c0_1] : memref<1x8x32xf32, #tpu.memory_space<vmem>>, vector<1x8x32xf32>
    %1 = vector.shape_cast %0 : vector<1x8x32xf32> to vector<8x32xf32>
    %2 = arith.truncf %1 : vector<8x32xf32> to vector<8x32xbf16>
    %c0_2 = arith.constant 0 : index
    %c0_3 = arith.constant 0 : index
    %3 = vector.load %arg3[%c0_2, %c0_3] : memref<32x96xf32, #tpu.memory_space<vmem>>, vector<32x96xf32>
    %4 = arith.truncf %3 : vector<32x96xf32> to vector<32x96xbf16>
    %cst = arith.constant dense<0.000000e+00> : vector<8x96xf32>
    %5 = tpu.matmul %2, %4, %cst {dimension_numbers = #tpu.dot_dimension_numbers<[1], [0], [0], [1], [0, 0, 1, 1], [], []>} : vector<8x32xbf16>, vector<32x96xbf16>, vector<8x96xf32> -> vector<8x96xf32>
    %c0_4 = arith.constant 0 : index
    %c0_5 = arith.constant 0 : index
    %6 = vector.load %arg4[%c0_4, %c0_5] : memref<1x96xf32, #tpu.memory_space<vmem>>, vector<1x96xf32>
    %7 = vector.broadcast %6 : vector<1x96xf32> to vector<8x96xf32>
    %8 = arith.addf %5, %7 : vector<8x96xf32>
    %c0_6 = arith.constant 0 : index
    %c0_7 = arith.constant 0 : index
    %c0_8 = arith.constant 0 : index
    %9 = vector.load %arg2[%c0_6, %c0_7, %c0_8] : memref<1x1x8xf32, #tpu.memory_space<vmem>>, vector<1x1x8xf32>
    %10 = vector.shape_cast %9 : vector<1x1x8xf32> to vector<1x8xf32>
    %c0_9 = arith.constant 0 : index
    %c0_10 = arith.constant 0 : index
    %11 = vector.load %arg5[%c0_9, %c0_10] : memref<32x32xf32, #tpu.memory_space<vmem>>, vector<32x32xf32>
    %12 = arith.truncf %11 : vector<32x32xf32> to vector<32x32xbf16>
    %cst_11 = arith.constant 0.000000e+00 : f32
    %13 = vector.broadcast %cst_11 : f32 to vector<8x32xf32>
    %14 = vector.extract_strided_slice %8 {offsets = [0, 0], sizes = [8, 16], strides = [1, 1]} : vector<8x96xf32> to vector<8x16xf32>
    %15 = arith.truncf %14 : vector<8x16xf32> to vector<8x16xbf16>
    %16 = vector.extract_strided_slice %8 {offsets = [0, 32], sizes = [8, 16], strides = [1, 1]} : vector<8x96xf32> to vector<8x16xf32>
    %17 = arith.truncf %16 : vector<8x16xf32> to vector<8x16xbf16>
    %18 = vector.extract_strided_slice %8 {offsets = [0, 64], sizes = [8, 16], strides = [1, 1]} : vector<8x96xf32> to vector<8x16xf32>
    %19 = arith.truncf %18 : vector<8x16xf32> to vector<8x16xbf16>
    %cst_12 = arith.constant dense<0.000000e+00> : vector<8x8xf32>
    %20 = tpu.matmul %15, %17, %cst_12 {dimension_numbers = #tpu.dot_dimension_numbers<[1], [1], [0], [0], [0, 0, 1, 0], [], []>} : vector<8x16xbf16>, vector<8x16xbf16>, vector<8x8xf32> -> vector<8x8xf32>
    %21 = vector.broadcast %10 : vector<1x8xf32> to vector<8x8xf32>
    %22 = arith.addf %20, %21 : vector<8x8xf32>
    %cst_13 = arith.constant dense<0xFF800000> : vector<8xf32>
    %23 = vector.multi_reduction <maximumf>, %22, %cst_13 [1] : vector<8x8xf32> to vector<8xf32>
    %24 = vector.shape_cast %23 : vector<8xf32> to vector<8x1xf32>
    %25 = vector.broadcast %24 : vector<8x1xf32> to vector<8x8xf32>
    %26 = arith.subf %22, %25 : vector<8x8xf32>
    %27 = math.exp %26 : vector<8x8xf32>
    %cst_14 = arith.constant dense<0.000000e+00> : vector<8xf32>
    %28 = vector.multi_reduction <add>, %27, %cst_14 [1] : vector<8x8xf32> to vector<8xf32>
    %29 = vector.shape_cast %28 : vector<8xf32> to vector<8x1xf32>
    %30 = tpu.reciprocal %29 {approx = true} : vector<8x1xf32> -> vector<8x1xf32>
    %31 = vector.broadcast %30 : vector<8x1xf32> to vector<8x8xf32>
    %32 = arith.mulf %27, %31 : vector<8x8xf32>
    %33 = arith.truncf %32 : vector<8x8xf32> to vector<8x8xbf16>
    %cst_15 = arith.constant dense<0.000000e+00> : vector<8x16xf32>
    %34 = tpu.matmul %33, %19, %cst_15 {dimension_numbers = #tpu.dot_dimension_numbers<[1], [0], [0], [1], [0, 0, 1, 1], [], []>} : vector<8x8xbf16>, vector<8x16xbf16>, vector<8x16xf32> -> vector<8x16xf32>
    %35 = arith.truncf %34 : vector<8x16xf32> to vector<8x16xbf16>
    %36 = vector.extract_strided_slice %12 {offsets = [0, 0], sizes = [16, 32], strides = [1, 1]} : vector<32x32xbf16> to vector<16x32xbf16>
    %cst_16 = arith.constant dense<0.000000e+00> : vector<8x32xf32>
    %37 = tpu.matmul %35, %36, %cst_16 {dimension_numbers = #tpu.dot_dimension_numbers<[1], [0], [0], [1], [0, 0, 1, 1], [], []>} : vector<8x16xbf16>, vector<16x32xbf16>, vector<8x32xf32> -> vector<8x32xf32>
    %38 = arith.addf %13, %37 : vector<8x32xf32>
    %39 = vector.extract_strided_slice %8 {offsets = [0, 16], sizes = [8, 16], strides = [1, 1]} : vector<8x96xf32> to vector<8x16xf32>
    %40 = arith.truncf %39 : vector<8x16xf32> to vector<8x16xbf16>
    %41 = vector.extract_strided_slice %8 {offsets = [0, 48], sizes = [8, 16], strides = [1, 1]} : vector<8x96xf32> to vector<8x16xf32>
    %42 = arith.truncf %41 : vector<8x16xf32> to vector<8x16xbf16>
    %43 = vector.extract_strided_slice %8 {offsets = [0, 80], sizes = [8, 16], strides = [1, 1]} : vector<8x96xf32> to vector<8x16xf32>
    %44 = arith.truncf %43 : vector<8x16xf32> to vector<8x16xbf16>
    %cst_17 = arith.constant dense<0.000000e+00> : vector<8x8xf32>
    %45 = tpu.matmul %40, %42, %cst_17 {dimension_numbers = #tpu.dot_dimension_numbers<[1], [1], [0], [0], [0, 0, 1, 0], [], []>} : vector<8x16xbf16>, vector<8x16xbf16>, vector<8x8xf32> -> vector<8x8xf32>
    %46 = vector.broadcast %10 : vector<1x8xf32> to vector<8x8xf32>
    %47 = arith.addf %45, %46 : vector<8x8xf32>
    %cst_18 = arith.constant dense<0xFF800000> : vector<8xf32>
    %48 = vector.multi_reduction <maximumf>, %47, %cst_18 [1] : vector<8x8xf32> to vector<8xf32>
    %49 = vector.shape_cast %48 : vector<8xf32> to vector<8x1xf32>
    %50 = vector.broadcast %49 : vector<8x1xf32> to vector<8x8xf32>
    %51 = arith.subf %47, %50 : vector<8x8xf32>
    %52 = math.exp %51 : vector<8x8xf32>
    %cst_19 = arith.constant dense<0.000000e+00> : vector<8xf32>
    %53 = vector.multi_reduction <add>, %52, %cst_19 [1] : vector<8x8xf32> to vector<8xf32>
    %54 = vector.shape_cast %53 : vector<8xf32> to vector<8x1xf32>
    %55 = tpu.reciprocal %54 {approx = true} : vector<8x1xf32> -> vector<8x1xf32>
    %56 = vector.broadcast %55 : vector<8x1xf32> to vector<8x8xf32>
    %57 = arith.mulf %52, %56 : vector<8x8xf32>
    %58 = arith.truncf %57 : vector<8x8xf32> to vector<8x8xbf16>
    %cst_20 = arith.constant dense<0.000000e+00> : vector<8x16xf32>
    %59 = tpu.matmul %58, %44, %cst_20 {dimension_numbers = #tpu.dot_dimension_numbers<[1], [0], [0], [1], [0, 0, 1, 1], [], []>} : vector<8x8xbf16>, vector<8x16xbf16>, vector<8x16xf32> -> vector<8x16xf32>
    %60 = arith.truncf %59 : vector<8x16xf32> to vector<8x16xbf16>
    %61 = vector.extract_strided_slice %12 {offsets = [16, 0], sizes = [16, 32], strides = [1, 1]} : vector<32x32xbf16> to vector<16x32xbf16>
    %cst_21 = arith.constant dense<0.000000e+00> : vector<8x32xf32>
    %62 = tpu.matmul %60, %61, %cst_21 {dimension_numbers = #tpu.dot_dimension_numbers<[1], [0], [0], [1], [0, 0, 1, 1], [], []>} : vector<8x16xbf16>, vector<16x32xbf16>, vector<8x32xf32> -> vector<8x32xf32>
    %63 = arith.addf %38, %62 : vector<8x32xf32>
    %c0_22 = arith.constant 0 : index
    %c0_23 = arith.constant 0 : index
    %64 = vector.load %arg6[%c0_22, %c0_23] : memref<1x32xf32, #tpu.memory_space<vmem>>, vector<1x32xf32>
    %65 = vector.broadcast %64 : vector<1x32xf32> to vector<8x32xf32>
    %66 = arith.addf %63, %65 : vector<8x32xf32>
    %67 = arith.addf %66, %1 : vector<8x32xf32>
    %c0_24 = arith.constant 0 : index
    %c0_25 = arith.constant 0 : index
    %68 = vector.load %arg7[%c0_24, %c0_25] : memref<1x32xf32, #tpu.memory_space<vmem>>, vector<1x32xf32>
    %c0_26 = arith.constant 0 : index
    %c0_27 = arith.constant 0 : index
    %69 = vector.load %arg8[%c0_26, %c0_27] : memref<1x32xf32, #tpu.memory_space<vmem>>, vector<1x32xf32>
    %cst_28 = arith.constant dense<0.000000e+00> : vector<8xf32>
    %70 = vector.multi_reduction <add>, %67, %cst_28 [1] : vector<8x32xf32> to vector<8xf32>
    %71 = vector.shape_cast %70 : vector<8xf32> to vector<8x1xf32>
    %cst_29 = arith.constant 3.200000e+01 : f32
    %72 = vector.broadcast %cst_29 : f32 to vector<8x1xf32>
    %73 = arith.divf %71, %72 : vector<8x1xf32>
    %74 = vector.broadcast %73 : vector<8x1xf32> to vector<8x32xf32>
    %75 = arith.subf %67, %74 : vector<8x32xf32>
    %76 = arith.mulf %75, %75 : vector<8x32xf32>
    %cst_30 = arith.constant dense<0.000000e+00> : vector<8xf32>
    %77 = vector.multi_reduction <add>, %76, %cst_30 [1] : vector<8x32xf32> to vector<8xf32>
    %78 = vector.shape_cast %77 : vector<8xf32> to vector<8x1xf32>
    %cst_31 = arith.constant 3.200000e+01 : f32
    %79 = vector.broadcast %cst_31 : f32 to vector<8x1xf32>
    %80 = arith.divf %78, %79 : vector<8x1xf32>
    %81 = vector.broadcast %73 : vector<8x1xf32> to vector<8x32xf32>
    %82 = arith.subf %67, %81 : vector<8x32xf32>
    %cst_32 = arith.constant 9.99999996E-13 : f32
    %83 = vector.broadcast %cst_32 : f32 to vector<8x1xf32>
    %84 = arith.addf %80, %83 : vector<8x1xf32>
    %85 = math.rsqrt %84 : vector<8x1xf32>
    %86 = vector.broadcast %85 : vector<8x1xf32> to vector<8x32xf32>
    %87 = arith.mulf %82, %86 : vector<8x32xf32>
    %88 = vector.broadcast %68 : vector<1x32xf32> to vector<8x32xf32>
    %89 = arith.mulf %87, %88 : vector<8x32xf32>
    %90 = vector.broadcast %69 : vector<1x32xf32> to vector<8x32xf32>
    %91 = arith.addf %89, %90 : vector<8x32xf32>
    %c0_33 = arith.constant 0 : index
    %c0_34 = arith.constant 0 : index
    %c0_35 = arith.constant 0 : index
    %92 = vector.load %arg9[%c0_33, %c0_34, %c0_35] : memref<1x8x32xf32, #tpu.memory_space<vmem>>, vector<1x8x32xf32>
    %93 = vector.shape_cast %92 : vector<1x8x32xf32> to vector<8x32xf32>
    %94 = vector.shape_cast %91 : vector<8x32xf32> to vector<1x8x32xf32>
    tpu.vector_store %arg9[%c0_33, %c0_34, %c0_35], %94 {strides = array<i32>} : memref<1x8x32xf32, #tpu.memory_space<vmem>>, vector<1x8x32xf32>,
    return
  }
  func.func @transform_0(%arg0: i32) -> (i32, i32, i32) {
    %c0_i32 = arith.constant 0 : i32
    %c0_i32_0 = arith.constant 0 : i32
    %c0_i32_1 = arith.constant 0 : i32
    return %arg0, %c0_i32, %c0_i32_0 : i32, i32, i32
  }
  func.func @transform_1(%arg0: i32) -> (i32, i32, i32) {
    %c0_i32 = arith.constant 0 : i32
    %c0_i32_0 = arith.constant 0 : i32
    %c0_i32_1 = arith.constant 0 : i32
    return %arg0, %c0_i32, %c0_i32_0 : i32, i32, i32
  }
  func.func @transform_2(%arg0: i32) -> (i32, i32) {
    %c0_i32 = arith.constant 0 : i32
    %c0_i32_0 = arith.constant 0 : i32
    %c0_i32_1 = arith.constant 0 : i32
    return %c0_i32, %c0_i32_0 : i32, i32
  }
  func.func @transform_3(%arg0: i32) -> (i32, i32) {
    %c0_i32 = arith.constant 0 : i32
    %c0_i32_0 = arith.constant 0 : i32
    %c0_i32_1 = arith.constant 0 : i32
    return %c0_i32, %c0_i32_0 : i32, i32
  }
  func.func @transform_4(%arg0: i32) -> (i32, i32) {
    %c0_i32 = arith.constant 0 : i32
    %c0_i32_0 = arith.constant 0 : i32
    %c0_i32_1 = arith.constant 0 : i32
    return %c0_i32, %c0_i32_0 : i32, i32
  }
  func.func @transform_5(%arg0: i32) -> (i32, i32) {
    %c0_i32 = arith.constant 0 : i32
    %c0_i32_0 = arith.constant 0 : i32
    %c0_i32_1 = arith.constant 0 : i32
    return %c0_i32, %c0_i32_0 : i32, i32
  }
  func.func @transform_6(%arg0: i32) -> (i32, i32) {
    %c0_i32 = arith.constant 0 : i32
    %c0_i32_0 = arith.constant 0 : i32
    %c0_i32_1 = arith.constant 0 : i32
    return %c0_i32, %c0_i32_0 : i32, i32
  }
  func.func @transform_7(%arg0: i32) -> (i32, i32) {
    %c0_i32 = arith.constant 0 : i32
    %c0_i32_0 = arith.constant 0 : i32
    %c0_i32_1 = arith.constant 0 : i32
    return %c0_i32, %c0_i32_0 : i32, i32
  }
  func.func @transform_8(%arg0: i32) -> (i32, i32, i32) {
    %c0_i32 = arith.constant 0 : i32
    %c0_i32_0 = arith.constant 0 : i32
    %c0_i32_1 = arith.constant 0 : i32
    return %arg0, %c0_i32, %c0_i32_0 : i32, i32, i32
  }
}

module attributes {stable_mosaic.version = 11 : i64} {
  func.func @_head_kernel(%arg0: memref<2x32xf32, #tpu.memory_space<vmem>>, %arg1: memref<32x32xf32, #tpu.memory_space<vmem>>, %arg2: memref<1x32xf32, #tpu.memory_space<vmem>>, %arg3: memref<32x16xf32, #tpu.memory_space<vmem>>, %arg4: memref<1x16xf32, #tpu.memory_space<vmem>>, %arg5: memref<16x3xf32, #tpu.memory_space<vmem>>, %arg6: memref<1x3xf32, #tpu.memory_space<vmem>>, %arg7: memref<2x3xf32, #tpu.memory_space<vmem>>) attributes {dimension_semantics = [], scalar_prefetch = 0 : i64, scratch_operands = 0 : i64, tpu.core_type = #tpu.core_type<tc>} {
    %c0 = arith.constant 0 : index
    %c0_0 = arith.constant 0 : index
    %0 = vector.load %arg0[%c0, %c0_0] : memref<2x32xf32, #tpu.memory_space<vmem>>, vector<2x32xf32>
    %1 = arith.truncf %0 : vector<2x32xf32> to vector<2x32xbf16>
    %c0_1 = arith.constant 0 : index
    %c0_2 = arith.constant 0 : index
    %2 = vector.load %arg1[%c0_1, %c0_2] : memref<32x32xf32, #tpu.memory_space<vmem>>, vector<32x32xf32>
    %3 = arith.truncf %2 : vector<32x32xf32> to vector<32x32xbf16>
    %cst = arith.constant dense<0.000000e+00> : vector<2x32xf32>
    %4 = tpu.matmul %1, %3, %cst {dimension_numbers = #tpu.dot_dimension_numbers<[1], [0], [0], [1], [0, 0, 1, 1], [], []>} : vector<2x32xbf16>, vector<32x32xbf16>, vector<2x32xf32> -> vector<2x32xf32>
    %c0_3 = arith.constant 0 : index
    %c0_4 = arith.constant 0 : index
    %5 = vector.load %arg2[%c0_3, %c0_4] : memref<1x32xf32, #tpu.memory_space<vmem>>, vector<1x32xf32>
    %6 = vector.broadcast %5 : vector<1x32xf32> to vector<2x32xf32>
    %7 = arith.addf %4, %6 : vector<2x32xf32>
    %8 = math.tanh %7 : vector<2x32xf32>
    %9 = arith.truncf %8 : vector<2x32xf32> to vector<2x32xbf16>
    %c0_5 = arith.constant 0 : index
    %c0_6 = arith.constant 0 : index
    %10 = vector.load %arg3[%c0_5, %c0_6] : memref<32x16xf32, #tpu.memory_space<vmem>>, vector<32x16xf32>
    %11 = arith.truncf %10 : vector<32x16xf32> to vector<32x16xbf16>
    %cst_7 = arith.constant dense<0.000000e+00> : vector<2x16xf32>
    %12 = tpu.matmul %9, %11, %cst_7 {dimension_numbers = #tpu.dot_dimension_numbers<[1], [0], [0], [1], [0, 0, 1, 1], [], []>} : vector<2x32xbf16>, vector<32x16xbf16>, vector<2x16xf32> -> vector<2x16xf32>
    %c0_8 = arith.constant 0 : index
    %c0_9 = arith.constant 0 : index
    %13 = vector.load %arg4[%c0_8, %c0_9] : memref<1x16xf32, #tpu.memory_space<vmem>>, vector<1x16xf32>
    %14 = vector.broadcast %13 : vector<1x16xf32> to vector<2x16xf32>
    %15 = arith.addf %12, %14 : vector<2x16xf32>
    %cst_10 = arith.constant 0.000000e+00 : f32
    %16 = vector.broadcast %cst_10 : f32 to vector<2x16xf32>
    %17 = arith.maximumf %15, %16 : vector<2x16xf32>
    %18 = arith.truncf %17 : vector<2x16xf32> to vector<2x16xbf16>
    %c0_11 = arith.constant 0 : index
    %c0_12 = arith.constant 0 : index
    %19 = vector.load %arg5[%c0_11, %c0_12] : memref<16x3xf32, #tpu.memory_space<vmem>>, vector<16x3xf32>
    %20 = arith.truncf %19 : vector<16x3xf32> to vector<16x3xbf16>
    %cst_13 = arith.constant dense<0.000000e+00> : vector<2x3xf32>
    %21 = tpu.matmul %18, %20, %cst_13 {dimension_numbers = #tpu.dot_dimension_numbers<[1], [0], [0], [1], [0, 0, 1, 1], [], []>} : vector<2x16xbf16>, vector<16x3xbf16>, vector<2x3xf32> -> vector<2x3xf32>
    %c0_14 = arith.constant 0 : index
    %c0_15 = arith.constant 0 : index
    %22 = vector.load %arg6[%c0_14, %c0_15] : memref<1x3xf32, #tpu.memory_space<vmem>>, vector<1x3xf32>
    %23 = vector.broadcast %22 : vector<1x3xf32> to vector<2x3xf32>
    %24 = arith.addf %21, %23 : vector<2x3xf32>
    %c0_16 = arith.constant 0 : index
    %c0_17 = arith.constant 0 : index
    %25 = vector.load %arg7[%c0_16, %c0_17] : memref<2x3xf32, #tpu.memory_space<vmem>>, vector<2x3xf32>
    tpu.vector_store %arg7[%c0_16, %c0_17], %24 {strides = array<i32>} : memref<2x3xf32, #tpu.memory_space<vmem>>, vector<2x3xf32>,
    return
  }
}

</mosaic_0001>

<bundles_post_ra>
// kernel: encoder_classifier_forward.6
= control target key start
LH: loop header
LB: loop body
LE: loop exit
PB: predicated region body
PF: predicated region fallthrough
CT: control target
= control target key end

     0   :  { %s301_s12 = smov 0   ;;  %s327_s0 = inlined_call_operand.vmem [shape: f32[2,8,32], index: 0, kind: input, shape index: {}]   ;;  %s328_s1 = inlined_call_operand.vmem [shape: f32[1,32], index: 1, kind: input, shape index: {}]   ;;  %s329_s2 = inlined_call_operand.vmem [shape: f32[1,32], index: 2, kind: input, shape index: {}]   ;;  %s330_s3 = inlined_call_operand.vmem [shape: f32[2,8,32], index: 3, kind: output, shape index: {}]  }
   0x1 LB: > { %s252_s13 = sadd.s32 4294967295, %s279_s12   ;;  %p256_p0 = scmp.ge.s32.totalorder %s279_s12, 1  ;;  %s279_s12 = sphi %s301_s12, %s13_s12  }
   0x2   : > { %p136_p1 = scmp.lt.s32.totalorder %s279_s12, 3 }
   0x4   : > { %p137_p2 = pnand %p256_p0, %p136_p1 }
   0x5   : > { %p158_p3 = scmp.lt.s32.totalorder (!%p137_p2), %s252_s13, 1  ;;  %vm169_vm0 = vcmask (!%p137_p2), 261120   ;;  %v259_v11 = vld [vmem:[%s328_s1] ss:$0 sm:$0xff] (!%p137_p2) }
   0x6   : > { %140 = sbr.rel (%p137_p2) target bundleno = 331 (0x14b), region = 32  ;;  %v260_v13 = vld [vmem:[%s329_s2] ss:$0 sm:$0xff] (!%p137_p2) }
   0xd   : > { %s332_s13 = smov (!%p158_p3, %s252_s13), 1 }
   0xe   : > { %s257_s14 = sshll.u32 %s332_s13, 3 }
   0xf   : > { %s161_s17 = scalar_lea.vmem %s327_s0, %s257_s14  ;;  %s165_s24 = scalar_lea.vmem %s330_s3, %s257_s14 }
  0x10   : > { %v166_v0 = vld [vmem:[%s161_s17] sm:$0xff] }
  0x11   : > { %v170_v1 = vsel %vm169_vm0, %v166_v0, 0.0 }
  0x12   : > { %171 = vadd.xlane.f32.xlu0 %v170_v1 }
  0x9f   : > { %v172_v2 = vpop.xlane.xlu0 %171 }
  0xa0   : > { %v174_v3 = vmul.f32 0.03125, %v172_v2 }
  0xa2   : > { %v175_v4 = vsub.f32 %v166_v0, %v174_v3 }
  0xa4   : > { %v176_v5 = vmul.f32 %v175_v4, %v175_v4 }
  0xa6   : > { %v177_v6 = vsel %vm169_vm0, %v176_v5, 0.0 }
  0xa7   : > { %178 = vadd.xlane.f32.xlu0 %v177_v6 }
 0x134   : > { %v179_v7 = vpop.xlane.xlu0 %178 }
 0x135   : > { %v180_v8 = vmul.f32 0.03125, %v179_v7 }
 0x137   : > { %v181_v9 = vadd.f32 1e-12, %v180_v8 }
 0x139   : > { %271 = vrsqrt.f32 %v181_v9 }
 0x143   : > { %v272_v10 = vpop.eup %271 }
 0x144   : > { %v183_v12 = vmul.f32 %v272_v10, %v175_v4 }
 0x146   : > { %v190_v14 = vmul.f32 %v259_v11, %v183_v12 }
 0x148   : > { %v197_v15 = vadd.f32 %v260_v13, %v190_v14 }
 0x14a   : > { %198 = vst.msk [vmem:[%s165_s24] sm:$0xff] %vm169_vm0, %v197_v15 }
 0x14b PF: > { %s13_s12 = sadd.s32 1, %s279_s12  }
 0x14c   : > { %p10_p4 = scmp.ge.s32.totalorder %s13_s12, 4  }
 0x14e   :  { %12 = sbr.rel (!%p10_p4) target bundleno = 1 (0x1), region = 62 }

// kernel: encoder_classifier_forward.8
= control target key start
LH: loop header
LB: loop body
LE: loop exit
PB: predicated region body
PF: predicated region fallthrough
CT: control target
= control target key end

     0   :  { %s599_s24 = smov 0   ;;  %s675_s0 = inlined_call_operand.vmem [shape: f32[2,8,32], index: 0, kind: input, shape index: {}]   ;;  %s676_s1 = inlined_call_operand.vmem [shape: f32[32,64], index: 1, kind: input, shape index: {}]   ;;  %s677_s2 = inlined_call_operand.vmem [shape: f32[1,64], index: 2, kind: input, shape index: {}]   ;;  %s678_s3 = inlined_call_operand.vmem [shape: f32[64,32], index: 3, kind: input, shape index: {}]   ;;  %s679_s4 = inlined_call_operand.vmem [shape: f32[1,32], index: 4, kind: input, shape index: {}]   ;;  %s680_s5 = inlined_call_operand.vmem [shape: f32[1,32], index: 5, kind: input, shape index: {}]   ;;  %s681_s6 = inlined_call_operand.vmem [shape: f32[1,32], index: 6, kind: input, shape index: {}]   ;;  %s682_s7 = inlined_call_operand.vmem [shape: f32[2,8,32], index: 7, kind: output, shape index: {}]  }
   0x1 LB: > { %s492_s25 = sadd.s32 4294967295, %s555_s24   ;;  %p496_p0 = scmp.ge.s32.totalorder %s555_s24, 1  ;;  %s555_s24 = sphi %s599_s24, %s17_s24  }
   0x2   : > { %p236_p1 = scmp.lt.s32.totalorder %s555_s24, 3 }
   0x4   : > { %p237_p2 = pnand %p496_p0, %p236_p1 }
   0x5   : > { %v277_v0 = vld [vmem:[%s676_s1] sm:$0xff] (!%p237_p2)  ;;  %v278_v1 = vld [vmem:[%s676_s1 + $0x8] sm:$0xff] (!%p237_p2)  ;;  %v279_v2 = vld [vmem:[%s676_s1 + $0x10] sm:$0xff] (!%p237_p2)  ;;  %p266_p3 = scmp.lt.s32.totalorder (!%p237_p2), %s492_s25, 1  ;;  %v557_v3 = vmov (!%p237_p2), 0.0   ;;  %vm558_vm0 = vmmov (!%p237_p2), 0  }
   0x6   : > { %240 = sbr.rel (%p237_p2) target bundleno = 790 (0x316), region = 48  ;;  %515 = vmatprep.subr.bf16.mxu0 (!%p237_p2), %v557_v3  ;;  %v281_v4 = vpack.c.bf16 (!%p237_p2), %v278_v1, %v277_v0  ;;  %v280_v5 = vld [vmem:[%s676_s1 + $0x18] sm:$0xff] (!%p237_p2)  ;;  %519 = vmatprep.mubr.msk.bf16.mxu0 (!%p237_p2), %vm558_vm0, %v557_v3  ;;  %vm290_vm1 = vcmask (!%p237_p2), 261120   ;;  %v344_v9 = vld [vmem:[%s678_s3] sm:$0xff] (!%p237_p2)  ;;  %v345_v10 = vld [vmem:[%s678_s3 + $0x8] sm:$0xff] (!%p237_p2)  ;;  %vm363_vm2 = vcmask (!%p237_p2), 523264  }
   0x7   : > { %523 = vmatprep.subr.bf16.mxu1 (!%p237_p2), %v557_v3  ;;  %531 = vmatprep.mubr.msk.bf16.mxu1 (!%p237_p2), %vm558_vm0, %v557_v3  ;;  %v282_v6 = vpack.c.bf16 (!%p237_p2), %v280_v5, %v279_v2  ;;  %v346_v11 = vld [vmem:[%s678_s3 + $0x10] sm:$0xff] (!%p237_p2)  ;;  %v352_v12 = vpack.c.bf16 (!%p237_p2), %v345_v10, %v344_v9  ;;  %v347_v13 = vld [vmem:[%s678_s3 + $0x18] sm:$0xff] (!%p237_p2)  ;;  %v348_v15 = vld [vmem:[%s678_s3 + $0x20] sm:$0xff] (!%p237_p2) }
   0x8   : > { %516 = vmatpush3.bf16.msra.mxu0 (!%p237_p2), %v281_v4  ;;  %v353_v14 = vpack.c.bf16 (!%p237_p2), %v347_v13, %v346_v11  ;;  %v349_v16 = vld [vmem:[%s678_s3 + $0x28] sm:$0xff] (!%p237_p2)  ;;  %v350_v18 = vld [vmem:[%s678_s3 + $0x30] sm:$0xff] (!%p237_p2)  ;;  %v351_v19 = vld [vmem:[%s678_s3 + $0x38] sm:$0xff] (!%p237_p2) }
   0x9   : > { %517 = vmatprep.subr.bf16.mxu0 (!%p237_p2), %v557_v3  ;;  %524 = vmatpush3.bf16.msra.mxu1 (!%p237_p2), %v352_v12  ;;  %v354_v17 = vpack.c.bf16 (!%p237_p2), %v349_v16, %v348_v15  ;;  %v355_v20 = vpack.c.bf16 (!%p237_p2), %v351_v19, %v350_v18  ;;  %v499_v21 = vld [vmem:[%s677_s2] ss:$0 sm:$0xff] (!%p237_p2) }
   0xa   : > { %525 = vmatprep.subr.bf16.mxu1 (!%p237_p2), %v557_v3  ;;  %v501_v37 = vld [vmem:[%s679_s4] ss:$0 sm:$0xff] (!%p237_p2) }
   0xb   : > { %v503_v54 = vld [vmem:[%s680_s5] ss:$0 sm:$0xff] (!%p237_p2) }
   0xc   : > { %518 = vmatpush3.bf16.msra.mxu0 (!%p237_p2), %v282_v6  ;;  %v504_v56 = vld [vmem:[%s681_s6] ss:$0 sm:$0xff] (!%p237_p2) }
   0xd   : > { %s684_s25 = smov (!%p266_p3, %s492_s25), 1  ;;  %526 = vmatpush3.bf16.msra.mxu1 %v353_v14 }
   0xe   : > { %s497_s11 = sshll.u32 %s684_s25, 3  ;;  %527 = vmatprep.subr.bf16.mxu1 %v557_v3 }
   0xf   : > { %s269_s14 = scalar_lea.vmem %s675_s0, %s497_s11  ;;  %s273_s21 = scalar_lea.vmem %s682_s7, %s497_s11 }
  0x10   : > { %v275_v7 = vld [vmem:[%s269_s14] sm:$0xff] }
  0x11   : > { %v276_v8 = vpack.c.bf16 %v275_v7, %v275_v7  ;;  %528 = vmatpush3.bf16.msra.mxu1 %v354_v17 }
  0x12   : > { %529 = vmatprep.subr.bf16.mxu1 %v557_v3 }
  0x13   : > { %520 = vmatmul.mubr.msk.bf16.vlgmr.msra.gmra.mrb[0].mxu0 %vm290_vm1, %v276_v8 }
  0x15   : > { %530 = vmatpush3.bf16.msra.mxu1 %v355_v20 }
  0xe6   : > { %v328_v22 = vpop.f32.mrb[0].mxu0 }
  0xe7   : > { %v329_v23 = vadd.f32 %v499_v21, %v328_v22  ;;  %v521_v24 = vpop.f32.mrb[1].mxu0 }
  0xe8   : > { %v331_v25 = vpop.f32.mrb[2].mxu0 }
  0xe9   : > { %v335_v26 = vmul.f32 0.044715, %v329_v23  ;;  %v522_v27 = vpop.f32.mrb[3].mxu0  ;;  %v334_v33 = vmul.f32 0.5, %v329_v23 }
  0xeb   : > { %v336_v28 = vmul.f32 %v335_v26, %v329_v23 }
  0xed   : > { %v337_v29 = vmul.f32 %v336_v28, %v329_v23 }
  0xef   : > { %v338_v30 = vadd.f32 %v337_v29, %v329_v23 }
  0xf1   : > { %v339_v31 = vmul.f32 0.7978846, %v338_v30 }
  0xf3   : > { %545 = vtanh.f32 %v339_v31 }
  0xfd   : > { %v546_v32 = vpop.eup %545 }
  0xfe   : > { %v341_v34 = vadd.f32 1.0, %v546_v32 }
 0x100   : > { %v342_v35 = vmul.f32 %v341_v34, %v334_v33 }
 0x102   : > { %v343_v36 = vpack.c.bf16 %v342_v35, %v342_v35 }
 0x104   : > { %532 = vmatmul.mubr.msk.bf16.vlgmr.msra.gmra.mrb[0].mxu1 %vm363_vm2, %v343_v36 }
 0x1d7   : > { %v401_v38 = vpop.f32.mrb[0].mxu1 }
 0x1d8   : > { %v402_v39 = vadd.f32 %v501_v37, %v401_v38  ;;  %v533_v40 = vpop.f32.mrb[1].mxu1 }
 0x1d9   : > { %v404_v41 = vpop.f32.mrb[2].mxu1 }
 0x1da   : > { %v534_v42 = vpop.f32.mrb[3].mxu1  ;;  %v407_v43 = vadd.f32 %v402_v39, %v275_v7 }
 0x1dc   : > { %v410_v44 = vsel %vm290_vm1, %v407_v43, 0.0 }
 0x1dd   : > { %411 = vadd.xlane.f32.xlu0 %v410_v44 }
 0x26a   : > { %v412_v45 = vpop.xlane.xlu0 %411 }
 0x26b   : > { %v414_v46 = vmul.f32 0.03125, %v412_v45 }
 0x26d   : > { %v415_v47 = vsub.f32 %v407_v43, %v414_v46 }
 0x26f   : > { %v416_v48 = vmul.f32 %v415_v47, %v415_v47 }
 0x271   : > { %v417_v49 = vsel %vm290_vm1, %v416_v48, 0.0 }
 0x272   : > { %418 = vadd.xlane.f32.xlu0 %v417_v49 }
 0x2ff   : > { %v419_v50 = vpop.xlane.xlu0 %418 }
 0x300   : > { %v420_v51 = vmul.f32 0.03125, %v419_v50 }
 0x302   : > { %v421_v52 = vadd.f32 1e-12, %v420_v51 }
 0x304   : > { %547 = vrsqrt.f32 %v421_v52 }
 0x30e   : > { %v548_v53 = vpop.eup %547 }
 0x30f   : > { %v423_v55 = vmul.f32 %v548_v53, %v415_v47 }
 0x311   : > { %v430_v57 = vmul.f32 %v503_v54, %v423_v55 }
 0x313   : > { %v437_v58 = vadd.f32 %v504_v56, %v430_v57 }
 0x315   : > { %438 = vst.msk [vmem:[%s273_s21] sm:$0xff] %vm290_vm1, %v437_v58 }
 0x316 PF: > { %s17_s24 = sadd.s32 1, %s555_s24  }
 0x317   : > { %p14_p4 = scmp.ge.s32.totalorder %s17_s24, 4  }
 0x319   :  { %16 = sbr.rel (!%p14_p4) target bundleno = 1 (0x1), region = 78 }

// kernel: encoder_classifier_forward.11
= control target key start
LH: loop header
LB: loop body
LE: loop exit
PB: predicated region body
PF: predicated region fallthrough
CT: control target
= control target key end

     0   :  { %v282_v3 = vmov 0.0   ;;  %vm283_vm0 = vmmov 0   ;;  %s381_s0 = inlined_call_operand.vmem [shape: f32[2,32], index: 0, kind: input, shape index: {}]   ;;  %s382_s1 = inlined_call_operand.vmem [shape: f32[32,32], index: 1, kind: input, shape index: {}]   ;;  %s383_s2 = inlined_call_operand.vmem [shape: f32[1,32], index: 2, kind: input, shape index: {}]   ;;  %s384_s3 = inlined_call_operand.vmem [shape: f32[32,16], index: 3, kind: input, shape index: {}]   ;;  %s385_s4 = inlined_call_operand.vmem [shape: f32[1,16], index: 4, kind: input, shape index: {}]   ;;  %s386_s5 = inlined_call_operand.vmem [shape: f32[16,3], index: 5, kind: input, shape index: {}]   ;;  %s387_s6 = inlined_call_operand.vmem [shape: f32[1,3], index: 6, kind: input, shape index: {}]   ;;  %s388_s7 = inlined_call_operand.hbm [shape: f32[2,3], index: 7, kind: output, shape index: {}]  }
   0x1   :  { %v30_v0 = vld [vmem:[%s382_s1] sm:$0xff]  ;;  %v31_v1 = vld [vmem:[%s382_s1 + $0x8] sm:$0xff]  ;;  %v32_v2 = vld [vmem:[%s382_s1 + $0x10] sm:$0xff]  ;;  %231 = vmatprep.subr.bf16.mxu0 %v282_v3  ;;  %235 = vmatprep.mubr.msk.bf16.mxu0 %vm283_vm0, %v282_v3 }
   0x2   :  { %v34_v4 = vpack.c.bf16 %v31_v1, %v30_v0  ;;  %v33_v5 = vld [vmem:[%s382_s1 + $0x18] sm:$0xff]  ;;  %239 = vmatprep.subr.bf16.mxu1 %v282_v3  ;;  %243 = vmatprep.mubr.msk.bf16.mxu1 %vm283_vm0, %v282_v3 }
   0x3   :  { %12 = vsyncpa [#allocation3], 0  ;;  %v35_v6 = vpack.c.bf16 %v33_v5, %v32_v2  ;;  %v28_v7 = vld [vmem:[%s381_s0] sm:$0x3]  ;;  %vm43_vm1 = vcmask 261120   ;;  %v90_v10 = vld [vmem:[%s384_s3 + $0x8] sm:$0xff] }
   0x4   :  { %232 = vmatpush3.bf16.msra.mxu0 %v34_v4  ;;  %v29_v8 = vpack.c.bf16 %v28_v7, %v28_v7  ;;  %v89_v9 = vld [vmem:[%s384_s3] sm:$0xff]  ;;  %v91_v12 = vld [vmem:[%s384_s3 + $0x10] sm:$0xff]  ;;  %v92_v13 = vld [vmem:[%s384_s3 + $0x18] sm:$0xff]  ;;  %vm157_vm2 = vcmask 130048   ;;  %s284_s24 = smov [#allocation2]   ;;  %vm201_vm3 = vcmask 17408  }
   0x5   :  { %233 = vmatprep.subr.bf16.mxu0 %v282_v3  ;;  %v93_v11 = vpack.c.bf16 %v90_v10, %v89_v9  ;;  %v94_v14 = vpack.c.bf16 %v92_v13, %v91_v12  ;;  %v147_v15 = vld [vmem:[%s386_s5] sm:$0xff]  ;;  %v148_v16 = vld [vmem:[%s386_s5 + $0x8] sm:$0xff]  ;;  %s209_s25 = sshll.u32 %s284_s24, 4  ;;  %s210_s25 = int_to_ptr.vmem [resolvable:$true] %s209_s25 }
   0x6   :  { %v149_v17 = vpack.c.bf16 %v148_v16, %v147_v15  ;;  %v217_v18 = vld [vmem:[%s383_s2] ss:$0 sm:$0xff]  ;;  %p263_p1 = scmp.lt.s32.totalorder %s210_s25, %s210_s25 }
   0x7   :  { %240 = vmatpush3.bf16.msra.mxu1 %v93_v11  ;;  %v219_v26 = vld [vmem:[%s385_s4] ss:$0 sm:$0xff]  ;;  %s258_s4 = scalar_lea.vmem %s210_s25, 32 }
   0x8   :  { %234 = vmatpush3.bf16.msra.mxu0 %v35_v6  ;;  %241 = vmatprep.subr.bf16.mxu1 %v282_v3  ;;  %v221_v34 = vld [vmem:[%s387_s6] ss:$0 sm:$0xff]  ;;  %p259_p0 = scmp.ne.s32.totalorder %s210_s25, %s258_s4  ;;  %p264_p2 = scmp.lt.s32.totalorder %s258_s4, %s258_s4 }
   0x9   :  { %247 = vmatprep.subr.bf16.mxu0 %v282_v3 }
   0xa   :  { %p265_p3 = por %p264_p2, %p263_p1 }
   0xb   :  { %236 = vmatmul.mubr.msk.bf16.vlgmr.msra.gmra.mrb[0].mxu0 %vm43_vm1, %v29_v8  ;;  %242 = vmatpush3.bf16.msra.mxu1 %v94_v14 }
   0xc   :  { %249 = vmatprep.mubr.msk.bf16.mxu0 %vm283_vm0, %v282_v3  ;;  %248 = vmatpush3.bf16.msra.mxu0 %v149_v17  ;;  %p266_p4 = pnand %p265_p3, %p259_p0 }
  0xde   :  { %v81_v19 = vpop.f32.mrb[0].mxu0 }
  0xdf   :  { %v82_v20 = vadd.f32 %v217_v18, %v81_v19  ;;  %v237_v21 = vpop.f32.mrb[1].mxu0 }
  0xe0   :  { %v84_v22 = vpop.f32.mrb[2].mxu0 }
  0xe1   :  { %256 = vtanh.f32 %v82_v20  ;;  %v238_v23 = vpop.f32.mrb[3].mxu0 }
  0xeb   :  { %v257_v24 = vpop.eup %256 }
  0xec   :  { %v88_v25 = vpack.c.bf16 %v257_v24, %v257_v24 }
  0xee   :  { %244 = vmatmul.mubr.msk.bf16.vlgmr.msra.gmra.mrb[0].mxu1 %vm43_vm1, %v88_v25 }
 0x1c1   :  { %v139_v27 = vpop.f32.mrb[0].mxu1 }
 0x1c2   :  { %v140_v28 = vadd.f32 %v219_v26, %v139_v27  ;;  %v245_v29 = vpop.f32.mrb[1].mxu1 }
 0x1c3   :  { %v142_v30 = vpop.f32.mrb[2].mxu1 }
 0x1c4   :  { %v145_v31 = vmax.f32 %v140_v28, 0.0  ;;  %v246_v32 = vpop.f32.mrb[3].mxu1 }
 0x1c6   :  { %v146_v33 = vpack.c.bf16 %v145_v31, %v145_v31 }
 0x1c8   :  { %250 = vmatmul.mubr.msk.bf16.vlgmr.msra.gmra.mrb[4].mxu0 %vm157_vm2, %v146_v33 }
 0x29b   :  { %v195_v35 = vpop.f32.mrb[4].mxu0 }
 0x29c   :  { %v196_v36 = vadd.f32 %v221_v34, %v195_v35  ;;  %v251_v37 = vpop.f32.mrb[5].mxu0 }
 0x29d   :  { %v198_v38 = vpop.f32.mrb[6].mxu0 }
 0x29e   :  { %v252_v39 = vpop.f32.mrb[7].mxu0  ;;  %202 = vst.msk [vmem:[#allocation2] sm:$0x3] %vm201_vm3, %v196_v36 }
 0x29f   :  { %269 = shalt.err (!%p266_p4)
}
 0x2a0   :  { %s270_s6 = scalar_lea.hbm %s388_s7, 32 }
 0x2a1   :  { %p271_p5 = scmp.ne.s32.totalorder %s388_s7, %s270_s6  ;;  %p274_p6 = scmp.lt.u32.totalorder %s270_s6, %s388_s7 }
 0x2a3   :  { %p276_p7 = pnand %p274_p6, %p271_p5 }
 0x2a5   :  { %279 = shalt.err (!%p276_p7)
}
 0x2a6   :  { %212 = dma.vmem_to_hbm [thread:$0]  %s210_s25, 32, %s388_s7, [#allocation3]  }
 0x2a7   :  { %280 = dma.done.wait [#allocation3], 32  }
 0x2a8   :  { %281 = vsyncadd [#allocation3], 4294967264 }
 0x2a9   :  { %216 = vsyncpa [#allocation3], 1 }

// kernel: encoder_classifier_forward.7
= control target key start
LH: loop header
LB: loop body
LE: loop exit
PB: predicated region body
PF: predicated region fallthrough
CT: control target
= control target key end

     0   :  { %s966_s27 = smov 0   ;;  %s1073_s0 = inlined_call_operand.vmem [shape: f32[2,8,32], index: 0, kind: input, shape index: {}]   ;;  %s1074_s1 = inlined_call_operand.vmem [shape: f32[2,1,8], index: 1, kind: input, shape index: {}]   ;;  %s1075_s2 = inlined_call_operand.vmem [shape: f32[32,96], index: 2, kind: input, shape index: {}]   ;;  %s1076_s3 = inlined_call_operand.vmem [shape: f32[1,96], index: 3, kind: input, shape index: {}]   ;;  %s1077_s4 = inlined_call_operand.vmem [shape: f32[32,32], index: 4, kind: input, shape index: {}]   ;;  %s1078_s5 = inlined_call_operand.vmem [shape: f32[1,32], index: 5, kind: input, shape index: {}]   ;;  %s1079_s6 = inlined_call_operand.vmem [shape: f32[1,32], index: 6, kind: input, shape index: {}]   ;;  %s1080_s7 = inlined_call_operand.vmem [shape: f32[1,32], index: 7, kind: input, shape index: {}]   ;;  %s1081_s8 = inlined_call_operand.vmem [shape: f32[2,8,32], index: 8, kind: output, shape index: {}]  }
   0x1 LB: > { %s801_s28 = sadd.s32 4294967295, %s912_s27   ;;  %p805_p0 = scmp.ge.s32.totalorder %s912_s27, 1  ;;  %s912_s27 = sphi %s966_s27, %s18_s27  }
   0x2   : > { %p269_p1 = scmp.lt.s32.totalorder %s912_s27, 3 }
   0x4   : > { %p270_p2 = pnand %p805_p0, %p269_p1 }
   0x5   : > { %v318_v0 = vld [vmem:[%s1075_s2] sm:$0xff] (!%p270_p2)  ;;  %v319_v1 = vld [vmem:[%s1075_s2 + $0x8] sm:$0xff] (!%p270_p2)  ;;  %v320_v2 = vld [vmem:[%s1075_s2 + $0x10] sm:$0xff] (!%p270_p2)  ;;  %p304_p3 = scmp.lt.s32.totalorder (!%p270_p2), %s801_s28, 1  ;;  %v914_v3 = vmov (!%p270_p2), 0.0   ;;  %vm915_vm0 = vmmov (!%p270_p2), 0  }
   0x6   : > { %273 = sbr.rel (%p270_p2) target bundleno = 1642 (0x66a), region = 52  ;;  %837 = vmatprep.subr.bf16.mxu0 (!%p270_p2), %v914_v3  ;;  %v322_v4 = vpack.c.bf16 (!%p270_p2), %v319_v1, %v318_v0  ;;  %v321_v5 = vld [vmem:[%s1075_s2 + $0x18] sm:$0xff] (!%p270_p2)  ;;  %841 = vmatprep.mubr.msk.bf16.mxu0 (!%p270_p2), %vm915_vm0, %v914_v3  ;;  %vm331_vm1 = vcmask (!%p270_p2), 261120   ;;  %v808_v9 = vld [vmem:[%s1076_s3] ss:$0 sm:$0xff] (!%p270_p2)  ;;  %s916_s21 = smov (!%p270_p2), 112  }
   0x7   : > { %845 = vmatprep.subr.bf16.mxu1 (!%p270_p2), %v914_v3  ;;  %847 = vmatprep.mubr.msk.bf16.mxu1 (!%p270_p2), %vm915_vm0, %v914_v3  ;;  %v323_v6 = vpack.c.bf16 (!%p270_p2), %v321_v5, %v320_v2  ;;  %s917_s22 = smov (!%p270_p2), 96   ;;  %s918_s23 = smov (!%p270_p2), 80   ;;  %vm392_vm2 = vcmask (!%p270_p2), 130048   ;;  %vm439_vm3 = vcmask (!%p270_p2), 64512   ;;  %vm457_vm4 = vcmask (!%p270_p2), 1043456   ;;  %v376_v56 = vld [vmem:[%s1077_s4] sm:$0xff] (!%p270_p2) }
   0x8   : > { %838 = vmatpush3.bf16.msra.mxu0 (!%p270_p2), %v322_v4  ;;  %s919_s29 = smov (!%p270_p2), 64   ;;  %s920_s30 = smov (!%p270_p2), 48   ;;  %v377_v57 = vld [vmem:[%s1077_s4 + $0x8] sm:$0xff] (!%p270_p2)  ;;  %v378_v59 = vld [vmem:[%s1077_s4 + $0x10] sm:$0xff] (!%p270_p2)  ;;  %v379_v60 = vld [vmem:[%s1077_s4 + $0x18] sm:$0xff] (!%p270_p2) }
   0x9   : > { %839 = vmatprep.subr.bf16.mxu0 (!%p270_p2), %v914_v3  ;;  %v380_v58 = vpack.c.bf16 (!%p270_p2), %v377_v57, %v376_v56  ;;  %v381_v61 = vpack.c.bf16 (!%p270_p2), %v379_v60, %v378_v59 }
   0xc   : > { %840 = vmatpush3.bf16.msra.mxu0 (!%p270_p2), %v323_v6 }
   0xd   : > { %s1083_s28 = smov (!%p304_p3, %s801_s28), 1  ;;  %851 = vmatprep.subr.bf16.mxu0 %v914_v3 }
   0xe   : > { %s806_s15 = sshll.u32 %s1083_s28, 3  ;;  %s310_s26 = scalar_lea.vmem %s1074_s1, %s1083_s28 }
   0xf   : > { %s307_s18 = scalar_lea.vmem %s1073_s0, %s806_s15  ;;  %v810_v21 = vld [vmem:[%s310_s26] ss:$0 sm:$0xff]  ;;  %s314_s26 = scalar_lea.vmem %s1081_s8, %s806_s15 }
  0x10   : > { %v1001_v7 = vld [vmem:[%s307_s18] sm:$0xff] }
  0x11   : > { %v317_v8 = vpack.c.bf16 %v1001_v7, %v1001_v7 }
  0x13   : > { %842 = vmatmul.mubr.msk.bf16.vlgmr.msra.gmra.mrb[0].mxu0 %vm331_vm1, %v317_v8 }
  0x14   : > { %853 = vmatprep.mubr.msk.bf16.mxu0 %vm915_vm0, %v914_v3 }
  0xe6   : > { %v369_v10 = vpop.f32.mrb[0].mxu0 }
  0xe7   : > { %v370_v11 = vadd.f32 %v808_v9, %v369_v10  ;;  %v843_v12 = vpop.f32.mrb[1].mxu0 }
  0xe8   : > { %v372_v13 = vpop.f32.mrb[2].mxu0 }
  0xe9   : > { %v382_v14 = vpack.c.bf16 %v370_v11, %v370_v11  ;;  %v844_v15 = vpop.f32.mrb[3].mxu0 }
  0xeb   : > { %502 = vrot.lane.b32.xlu1 %v382_v14, %s916_s21  ;;  %390 = vrot.lane.b32.xlu0 %v382_v14, %s917_s22 }
  0xef   : > { %504 = vrot.lane.b32.xlu0 %v382_v14, %s918_s23 }
 0x15d   : > { %v391_v16 = vpop.permute.xlu0 %390  ;;  %v503_v20 = vpop.permute.xlu1 %502 }
 0x15e   : > { %v397_v17 = vsel %vm392_vm2, %v391_v16, 0 }
 0x15f   : > { %846 = vmatpush3.bf16.xpose.msra.mxu1 %v397_v17 }
 0x160   : > { %857 = vmatprep.subr.bf16.mxu1 %v914_v3 }
 0x161   : > { %v505_v18 = vpop.permute.xlu0 %504 }
 0x162   : > { %v510_v19 = vsel %vm392_vm2, %v505_v18, 0 }
 0x166   : > { %848 = vmatmul.mubr.msk.bf16.vlgmr.msra.gmra.mrb[0].mxu1 %vm392_vm2, %v382_v14 }
 0x167   : > { %858 = vmatpush3.bf16.xpose.msra.mxu1 %v510_v19  ;;  %859 = vmatprep.mubr.msk.bf16.mxu1 %vm915_vm0, %v914_v3 }
 0x168   : > { %869 = vmatprep.subr.bf16.mxu1 %v914_v3 }
 0x16e   : > { %860 = vmatmul.mubr.msk.bf16.vlgmr.msra.gmra.mrb[4].mxu1 %vm392_vm2, %v503_v20 }
 0x16f   : > { %871 = vmatprep.mubr.msk.bf16.mxu1 %vm915_vm0, %v914_v3  ;;  %870 = vmatpush3.bf16.msra.mxu1 %v381_v61 }
 0x239   : > { %v433_v22 = vpop.f32.mrb[0].mxu1 }
 0x23a   : > { %v434_v23 = vadd.f32 %v810_v21, %v433_v22  ;;  %v849_v24 = vpop.f32.mrb[1].mxu1 }
 0x23b   : > { %v436_v25 = vpop.f32.mrb[2].mxu1 }
 0x23c   : > { %v850_v26 = vpop.f32.mrb[3].mxu1  ;;  %v440_v27 = vsel %vm439_vm3, %v434_v23, -inf }
 0x23d   : > { %441 = vmax.xlane.f32.xlu1 %v440_v27 }
 0x241   : > { %v546_v28 = vpop.f32.mrb[4].mxu1 }
 0x242   : > { %v547_v29 = vadd.f32 %v810_v21, %v546_v28  ;;  %v861_v30 = vpop.f32.mrb[5].mxu1 }
 0x243   : > { %v549_v31 = vpop.f32.mrb[6].mxu1 }
 0x244   : > { %v862_v32 = vpop.f32.mrb[7].mxu1  ;;  %v552_v33 = vsel %vm439_vm3, %v547_v29, -inf }
 0x245   : > { %553 = vmax.xlane.f32.xlu0 %v552_v33  ;;  %v819_v32 = vld [vmem:[%s1080_s7] ss:$0 sm:$0xff] }
 0x2ca   : > { %v442_v34 = vpop.xlane.xlu1 %441 }
 0x2cb   : > { %v443_v35 = vsub.f32 %v434_v23, %v442_v34 }
 0x2cd   : > { %v444_v36 = vmul.f32 1.442695, %v443_v35 }
 0x2cf   : > { %896 = vpow2.f32 %v444_v36 }
 0x2d2   : > { %v554_v37 = vpop.xlane.xlu0 %553 }
 0x2d3   : > { %v555_v38 = vsub.f32 %v547_v29, %v554_v37 }
 0x2d5   : > { %v556_v39 = vmul.f32 1.442695, %v555_v38 }
 0x2d7   : > { %898 = vpow2.f32 %v556_v39 }
 0x2d9   : > { %v897_v40 = vpop.eup %896 }
 0x2da   : > { %v446_v41 = vsel %vm439_vm3, %v897_v40, 0.0 }
 0x2db   : > { %447 = vadd.xlane.f32.xlu0 %v446_v41 }
 0x2e1   : > { %v899_v42 = vpop.eup %898 }
 0x2e2   : > { %v558_v43 = vsel %vm439_vm3, %v899_v42, 0.0 }
 0x2e3   : > { %559 = vadd.xlane.f32.xlu1 %v558_v43 }
 0x2f1   : > { %452 = vrot.lane.b32.xlu0 %v382_v14, %s919_s29 }
 0x2f4   : > { %564 = vrot.lane.b32.xlu1 %v382_v14, %s920_s30  ;;  %v817_v14 = vld [vmem:[%s1078_s5] ss:$0 sm:$0xff] }
 0x368   : > { %v448_v44 = vpop.xlane.xlu0 %447 }
 0x369   : > { %900 = vrcp.f32 %v448_v44 }
 0x36c   : > { %v453_v45 = vpop.permute.xlu0 %452 }
 0x36d   : > { %v459_v46 = vsel %vm457_vm4, %v453_v45, 0 }
 0x36e   : > { %852 = vmatpush3.bf16.msra.mxu0 %v459_v46 }
 0x36f   : > { %863 = vmatprep.subr.bf16.mxu0 %v914_v3 }
 0x370   : > { %v560_v47 = vpop.xlane.xlu1 %559 }
 0x371   : > { %902 = vrcp.f32 %v560_v47 }
 0x373   : > { %v901_v48 = vpop.eup %900 }
 0x374   : > { %v450_v49 = vmul.f32 %v901_v48, %v897_v40  ;;  %v565_v50 = vpop.permute.xlu1 %564 }
 0x375   : > { %v570_v52 = vsel %vm457_vm4, %v565_v50, 0 }
 0x376   : > { %v451_v51 = vpack.c.bf16 %v450_v49, %v450_v49 }
 0x378   : > { %854 = vmatmul.mubr.msk.bf16.vlgmr.msra.gmra.mrb[4].mxu0 %vm439_vm3, %v451_v51 }
 0x379   : > { %864 = vmatpush3.bf16.msra.mxu0 %v570_v52  ;;  %865 = vmatprep.mubr.msk.bf16.mxu0 %vm915_vm0, %v914_v3 }
 0x37a   : > { %875 = vmatprep.subr.bf16.mxu0 %v914_v3 }
 0x37b   : > { %v903_v53 = vpop.eup %902 }
 0x37c   : > { %v562_v54 = vmul.f32 %v903_v53, %v899_v42 }
 0x37e   : > { %v563_v55 = vpack.c.bf16 %v562_v54, %v562_v54 }
 0x380   : > { %866 = vmatmul.mubr.msk.bf16.vlgmr.msra.gmra.mrb[8].mxu0 %vm439_vm3, %v563_v55 }
 0x381   : > { %877 = vmatprep.mubr.msk.bf16.mxu0 %vm915_vm0, %v914_v3  ;;  %876 = vmatpush3.bf16.msra.mxu0 %v380_v58 }
 0x44b   : > { %v495_v62 = vpop.f32.mrb[4].mxu0 }
 0x44c   : > { %v501_v63 = vpack.c.bf16 %v495_v62, %v495_v62  ;;  %v855_v0 = vpop.f32.mrb[5].mxu0 }
 0x44d   : > { %v498_v1 = vpop.f32.mrb[6].mxu0 }
 0x44e   : > { %v856_v2 = vpop.f32.mrb[7].mxu0  ;;  %878 = vmatmul.mubr.msk.bf16.vlgmr.msra.gmra.mrb[12].mxu0 %vm392_vm2, %v501_v63 }
 0x453   : > { %v606_v3 = vpop.f32.mrb[8].mxu0 }
 0x454   : > { %v612_v4 = vpack.c.bf16 %v606_v3, %v606_v3  ;;  %v867_v5 = vpop.f32.mrb[9].mxu0 }
 0x455   : > { %v609_v6 = vpop.f32.mrb[10].mxu0 }
 0x456   : > { %v868_v8 = vpop.f32.mrb[11].mxu0  ;;  %872 = vmatmul.mubr.msk.bf16.vlgmr.msra.gmra.mrb[8].mxu1 %vm392_vm2, %v612_v4 }
 0x521   : > { %v693_v9 = vpop.f32.mrb[12].mxu0 }
 0x522   : > { %v879_v10 = vpop.f32.mrb[13].mxu0 }
 0x523   : > { %v696_v11 = vpop.f32.mrb[14].mxu0 }
 0x524   : > { %v880_v12 = vpop.f32.mrb[15].mxu0 }
 0x529   : > { %v650_v13 = vpop.f32.mrb[8].mxu1 }
 0x52a   : > { %v694_v15 = vadd.f32 %v693_v9, %v650_v13  ;;  %v873_v16 = vpop.f32.mrb[9].mxu1 }
 0x52b   : > { %v653_v17 = vpop.f32.mrb[10].mxu1 }
 0x52c   : > { %v706_v18 = vadd.f32 %v817_v14, %v694_v15  ;;  %v874_v19 = vpop.f32.mrb[11].mxu1 }
 0x52e   : > { %v707_v20 = vadd.f32 %v706_v18, %v1001_v7  ;;  %v818_v7 = vld [vmem:[%s1079_s6] ss:$0 sm:$0xff] }
 0x530   : > { %v710_v21 = vsel %vm331_vm1, %v707_v20, 0.0 }
 0x531   : > { %711 = vadd.xlane.f32.xlu1 %v710_v21 }
 0x5be   : > { %v712_v22 = vpop.xlane.xlu1 %711 }
 0x5bf   : > { %v714_v23 = vmul.f32 0.03125, %v712_v22 }
 0x5c1   : > { %v715_v24 = vsub.f32 %v707_v20, %v714_v23 }
 0x5c3   : > { %v716_v25 = vmul.f32 %v715_v24, %v715_v24 }
 0x5c5   : > { %v717_v26 = vsel %vm331_vm1, %v716_v25, 0.0 }
 0x5c6   : > { %718 = vadd.xlane.f32.xlu0 %v717_v26 }
 0x653   : > { %v719_v27 = vpop.xlane.xlu0 %718 }
 0x654   : > { %v720_v28 = vmul.f32 0.03125, %v719_v27 }
 0x656   : > { %v721_v29 = vadd.f32 1e-12, %v720_v28 }
 0x658   : > { %904 = vrsqrt.f32 %v721_v29 }
 0x662   : > { %v905_v30 = vpop.eup %904 }
 0x663   : > { %v723_v31 = vmul.f32 %v905_v30, %v715_v24 }
 0x665   : > { %v730_v33 = vmul.f32 %v818_v7, %v723_v31 }
 0x667   : > { %v737_v34 = vadd.f32 %v819_v32, %v730_v33 }
 0x669   : > { %738 = vst.msk [vmem:[%s314_s26] sm:$0xff] %vm331_vm1, %v737_v34 }
 0x66a PF: > { %s18_s27 = sadd.s32 1, %s912_s27  }
 0x66b   : > { %p15_p4 = scmp.ge.s32.totalorder %s18_s27, 4  }
 0x66d   :  { %17 = sbr.rel (!%p15_p4) target bundleno = 1 (0x1), region = 85 }

</bundles_post_ra>
